<compile_context>
chip_gen: v5e
topology: v5e:2x2
jax: 0.10.0
libtpu: 0.0.40
codegen_flags: <defaults>
</compile_context>

<pallas_src>
import functools

import jax
import jax.numpy as jnp
from jax.experimental import pallas as pl
from jax.experimental.pallas import tpu as pltpu


def _round_up(x: int, m: int) -> int:
    return (x + m - 1) // m * m


def _cdiv(a: int, b: int) -> int:
    return (a + b - 1) // b


def simplenet_kernel(x_ref, w1_ref, b1_ref, w2_ref, b2_ref, o_ref):
    # fc1: (TB, D_in) @ (D_in, H_p) on the MXU in bf16 with f32 accumulation, bias + ReLU on VPU.
    x = x_ref[...].astype(jnp.bfloat16)
    h = jnp.dot(x, w1_ref[...], preferred_element_type=jnp.float32)
    h = jnp.maximum(h + b1_ref[...], 0.0)
    # TODO(synk): nn.Dropout(0.3) is stochastic in training mode; this kernel implements
    # eval-mode (identity) semantics, matching deterministic inference.
    # fc2: (TB, H_p) @ (H_p, D_out) + (1, D_out), bf16 operands, f32 accumulation.
    out = jnp.dot(h.astype(jnp.bfloat16), w2_ref[...], preferred_element_type=jnp.float32)
    out = out + b2_ref[...]
    # Sigmoid: exp and the approx reciprocal both use the EUP slot (a divide would hit the VPU).
    o_ref[...] = pl.reciprocal(1.0 + jnp.exp(-out), approx=True)


def prepare_params(w1, b1, w2, b2):
    """One-time (init-time) param prep: pad hidden dim to a lane multiple, cast matmul weights
    to bf16. Keeps the per-call jit path free of weight pads/casts.

    w1: (D_in, H), b1: (1, H), w2: (H, D_out), b2: (1, D_out) -- all float32.
    """
    H = w1.shape[1]
    # 128-aligned hidden dim; use 256 alignment for best MXU utilization on v6e/v7x at large H.
    H_p = _round_up(H, 128)
    w1_p = jnp.pad(w1, ((0, 0), (0, H_p - H))).astype(jnp.bfloat16)
    b1_p = jnp.pad(b1, ((0, 0), (0, H_p - H))).astype(jnp.float32)
    w2_p = jnp.pad(w2, ((0, H_p - H), (0, 0))).astype(jnp.bfloat16)
    b2_p = b2.astype(jnp.float32)
    return w1_p, b1_p, w2_p, b2_p


@functools.partial(jax.jit, static_argnames=("block_b",))
def simplenet_forward(x, w1, b1, w2, b2, *, block_b=512):
    """Forward pass.

    x: (B, D_in) float32. w1: (D_in, H_p) bf16; b1: (1, H_p) f32; w2: (H_p, D_out) bf16;
    b2: (1, D_out) f32  (as produced by prepare_params).
    """
    B, D_in = x.shape
    H_p = w1.shape[1]
    D_out = w2.shape[1]

    # Balanced batch tiling: minimize padding; >=2 grid steps when possible so v7x's second
    # TensorCore gets work under dimension_semantics=("parallel",).
    num_tiles = max(_cdiv(B, block_b), 2 if B >= 16 else 1)
    TB = _round_up(_cdiv(B, num_tiles), 8)
    B_p = _round_up(B, TB)
    if B_p != B:
        # Minimal batch padding only (no lane-dim padding of the activations).
        x = jnp.pad(x, ((0, B_p - B), (0, 0)))
    grid = (B_p // TB,)

    cost = pl.CostEstimate(
        flops=2 * B_p * (D_in * H_p + H_p * D_out),
        transcendentals=2 * B_p * D_out,  # exp + approx reciprocal per output element
        bytes_accessed=(4 * B_p * D_in            # x (f32)
                        + 2 * D_in * H_p + 4 * H_p       # w1 (bf16) + b1 (f32)
                        + 2 * H_p * D_out + 4 * D_out    # w2 (bf16) + b2 (f32)
                        + 4 * B_p * D_out),              # out (f32)
    )

    out = pl.pallas_call(
        simplenet_kernel,
        out_shape=jax.ShapeDtypeStruct((B_p, D_out), jnp.float32),
        grid=grid,
        in_specs=[
            # x: tiled over the batch, full (unpadded) feature dim == array dim -> legal block.
            pl.BlockSpec((TB, D_in), lambda i: (i, 0)),
            # Weights/biases: constant index_map + single buffer -> VMEM-resident, no re-DMA,
            # no double-buffer waste.
            pl.BlockSpec((D_in, H_p), lambda i: (0, 0), pipeline_mode=pl.Buffered(1)),
            pl.BlockSpec((1, H_p), lambda i: (0, 0), pipeline_mode=pl.Buffered(1)),
            pl.BlockSpec((H_p, D_out), lambda i: (0, 0), pipeline_mode=pl.Buffered(1)),
            pl.BlockSpec((1, D_out), lambda i: (0, 0), pipeline_mode=pl.Buffered(1)),
        ],
        # Output keeps the true D_out (== full array dim): no 128x-inflated writeback.
        out_specs=pl.BlockSpec((TB, D_out), lambda i: (i, 0)),
        compiler_params=pltpu.CompilerParams(
            dimension_semantics=("parallel",),      # shard batch tiles across v7x's 2 TCs
            vmem_limit_bytes=64 * 1024 * 1024,      # <= physical on v5e/v6e/v7x; sweep up on v5e/v6e
        ),
        cost_estimate=cost,
    )(x, w1, b1, w2, b2)

    return out[:B, :]


def init_params(key, input_dim, hidden_dim, output_dim):
    """Deterministic init mimicking PyTorch nn.Linear default: U(-1/sqrt(fan_in), 1/sqrt(fan_in))."""
    k1, k2, k3, k4 = jax.random.split(key, 4)
    bound1 = 1.0 / jnp.sqrt(input_dim)
    bound2 = 1.0 / jnp.sqrt(hidden_dim)
    # stored already transposed: (in, out)
    w1 = jax.random.uniform(k1, (input_dim, hidden_dim), jnp.float32, -bound1, bound1)
    b1 = jax.random.uniform(k2, (1, hidden_dim), jnp.float32, -bound1, bound1)
    w2 = jax.random.uniform(k3, (hidden_dim, output_dim), jnp.float32, -bound2, bound2)
    b2 = jax.random.uniform(k4, (1, output_dim), jnp.float32, -bound2, bound2)
    return w1, b1, w2, b2


if __name__ == "__main__":
    batch = 8
    input_dim = 16
    hidden_dim = 32
    output_dim = 1

    key = jax.random.PRNGKey(0)
    kx, kp = jax.random.split(key)
    x = jax.random.normal(kx, (batch, input_dim), jnp.float32)
    w1, b1, w2, b2 = init_params(kp, input_dim, hidden_dim, output_dim)

    # One-time padding + bf16 cast (outside the per-call jit path).
    w1_p, b1_p, w2_p, b2_p = prepare_params(w1, b1, w2, b2)

    out = simplenet_forward(x, w1_p, b1_p, w2_p, b2_p)
    out = jax.block_until_ready(out)
    assert out.shape == (batch, output_dim)

    # Reference 1: identical bf16-rounded operands, f32 math (isolates MXU accumulation order
    # and the approx reciprocal; zero-padded hidden columns/rows contribute exactly 0).
    xb = x.astype(jnp.bfloat16).astype(jnp.float32)
    w1f = w1_p.astype(jnp.float32)
    w2f = w2_p.astype(jnp.float32)
    h_ref = jnp.maximum(xb @ w1f + b1_p, 0.0)
    ref_bf16 = jax.nn.sigmoid(h_ref.astype(jnp.bfloat16).astype(jnp.float32) @ w2f + b2_p)
    assert jnp.allclose(out, ref_bf16, atol=2e-3, rtol=2e-3)

    # Reference 2: pure-f32 PyTorch semantics (eval-mode dropout = identity); looser tol for bf16 drift.
    ref_f32 = jax.nn.sigmoid(jnp.maximum(x @ w1 + b1, 0.0) @ w2 + b2)
    assert jnp.allclose(out, ref_f32, atol=2e-2, rtol=2e-2)

    print("KERNEL_OK")
</pallas_src>

<mosaic_0001>
module attributes {stable_mosaic.version = 11 : i64} {
  func.func @simplenet_kernel(%arg0: i32, %arg1: memref<8x16xf32, #tpu.memory_space<vmem>>, %arg2: memref<16x128xbf16, #tpu.memory_space<vmem>>, %arg3: memref<1x128xf32, #tpu.memory_space<vmem>>, %arg4: memref<128x1xbf16, #tpu.memory_space<vmem>>, %arg5: memref<1x1xf32, #tpu.memory_space<vmem>>, %arg6: memref<8x1xf32, #tpu.memory_space<vmem>>) attributes {dimension_semantics = [#tpu.dimension_semantics<parallel>], iteration_bounds = array<i64: 1>, scalar_prefetch = 0 : i64, scratch_operands = 0 : i64, tpu.core_type = #tpu.core_type<tc>, window_params = [{transform_indices = @transform_0, window_bounds = array<i64: 8, 16>}, {pipeline_mode = #tpu.pipeline_mode<synchronous>, transform_indices = @transform_1, window_bounds = array<i64: 16, 128>}, {pipeline_mode = #tpu.pipeline_mode<synchronous>, transform_indices = @transform_2, window_bounds = array<i64: 1, 128>}, {pipeline_mode = #tpu.pipeline_mode<synchronous>, transform_indices = @transform_3, window_bounds = array<i64: 128, 1>}, {pipeline_mode = #tpu.pipeline_mode<synchronous>, transform_indices = @transform_4, window_bounds = array<i64: 1, 1>}, {transform_indices = @transform_5, window_bounds = array<i64: 8, 1>}]} {
    %c0 = arith.constant 0 : index
    %c0_0 = arith.constant 0 : index
    %0 = vector.load %arg1[%c0, %c0_0] : memref<8x16xf32, #tpu.memory_space<vmem>>, vector<8x16xf32>
    %1 = arith.truncf %0 : vector<8x16xf32> to vector<8x16xbf16>
    %c0_1 = arith.constant 0 : index
    %c0_2 = arith.constant 0 : index
    %2 = vector.load %arg2[%c0_1, %c0_2] : memref<16x128xbf16, #tpu.memory_space<vmem>>, vector<16x128xbf16>
    %cst = arith.constant dense<0.000000e+00> : vector<8x128xf32>
    %3 = tpu.matmul %1, %2, %cst {dimension_numbers = #tpu.dot_dimension_numbers<[1], [0], [0], [1], [0, 0, 1, 1], [], []>} : vector<8x16xbf16>, vector<16x128xbf16>, vector<8x128xf32> -> vector<8x128xf32>
    %c0_3 = arith.constant 0 : index
    %c0_4 = arith.constant 0 : index
    %4 = vector.load %arg3[%c0_3, %c0_4] : memref<1x128xf32, #tpu.memory_space<vmem>>, vector<1x128xf32>
    %5 = vector.broadcast %4 : vector<1x128xf32> to vector<8x128xf32>
    %6 = arith.addf %3, %5 : vector<8x128xf32>
    %cst_5 = arith.constant 0.000000e+00 : f32
    %7 = vector.broadcast %cst_5 : f32 to vector<8x128xf32>
    %8 = arith.maximumf %6, %7 : vector<8x128xf32>
    %9 = arith.truncf %8 : vector<8x128xf32> to vector<8x128xbf16>
    %c0_6 = arith.constant 0 : index
    %c0_7 = arith.constant 0 : index
    %10 = vector.load %arg4[%c0_6, %c0_7] : memref<128x1xbf16, #tpu.memory_space<vmem>>, vector<128x1xbf16>
    %cst_8 = arith.constant dense<0.000000e+00> : vector<8x1xf32>
    %11 = tpu.matmul %9, %10, %cst_8 {dimension_numbers = #tpu.dot_dimension_numbers<[1], [0], [0], [1], [0, 0, 1, 1], [], []>} : vector<8x128xbf16>, vector<128x1xbf16>, vector<8x1xf32> -> vector<8x1xf32>
    %c0_9 = arith.constant 0 : index
    %c0_10 = arith.constant 0 : index
    %12 = vector.load %arg5[%c0_9, %c0_10] : memref<1x1xf32, #tpu.memory_space<vmem>>, vector<1x1xf32>
    %13 = vector.broadcast %12 : vector<1x1xf32> to vector<8x1xf32>
    %14 = arith.addf %11, %13 : vector<8x1xf32>
    %cst_11 = arith.constant 0.000000e+00 : f32
    %15 = vector.broadcast %cst_11 : f32 to vector<8x1xf32>
    %16 = arith.subf %15, %14 : vector<8x1xf32>
    %17 = math.exp %16 : vector<8x1xf32>
    %cst_12 = arith.constant 1.000000e+00 : f32
    %18 = vector.broadcast %cst_12 : f32 to vector<8x1xf32>
    %19 = arith.addf %18, %17 : vector<8x1xf32>
    %20 = tpu.reciprocal %19 {approx = true} : vector<8x1xf32> -> vector<8x1xf32>
    %c0_13 = arith.constant 0 : index
    %c0_14 = arith.constant 0 : index
    %21 = vector.load %arg6[%c0_13, %c0_14] : memref<8x1xf32, #tpu.memory_space<vmem>>, vector<8x1xf32>
    tpu.vector_store %arg6[%c0_13, %c0_14], %20 {strides = array<i32>} : memref<8x1xf32, #tpu.memory_space<vmem>>, vector<8x1xf32>,
    return
  }
  func.func @transform_0(%arg0: i32) -> (i32, i32) {
    %c0_i32 = arith.constant 0 : i32
    %c0_i32_0 = arith.constant 0 : i32
    return %arg0, %c0_i32 : i32, i32
  }
  func.func @transform_1(%arg0: i32) -> (i32, i32) {
    %c0_i32 = arith.constant 0 : i32
    %c0_i32_0 = arith.constant 0 : i32
    %c0_i32_1 = arith.constant 0 : i32
    return %c0_i32, %c0_i32_0 : i32, i32
  }
  func.func @transform_2(%arg0: i32) -> (i32, i32) {
    %c0_i32 = arith.constant 0 : i32
    %c0_i32_0 = arith.constant 0 : i32
    %c0_i32_1 = arith.constant 0 : i32
    return %c0_i32, %c0_i32_0 : i32, i32
  }
  func.func @transform_3(%arg0: i32) -> (i32, i32) {
    %c0_i32 = arith.constant 0 : i32
    %c0_i32_0 = arith.constant 0 : i32
    %c0_i32_1 = arith.constant 0 : i32
    return %c0_i32, %c0_i32_0 : i32, i32
  }
  func.func @transform_4(%arg0: i32) -> (i32, i32) {
    %c0_i32 = arith.constant 0 : i32
    %c0_i32_0 = arith.constant 0 : i32
    %c0_i32_1 = arith.constant 0 : i32
    return %c0_i32, %c0_i32_0 : i32, i32
  }
  func.func @transform_5(%arg0: i32) -> (i32, i32) {
    %c0_i32 = arith.constant 0 : i32
    %c0_i32_0 = arith.constant 0 : i32
    return %arg0, %c0_i32 : i32, i32
  }
}

</mosaic_0001>

<bundles_post_ra>
// kernel: simplenet_forward.1
= control target key start
LH: loop header
LB: loop body
LE: loop exit
PB: predicated region body
PF: predicated region fallthrough
CT: control target
= control target key end

     0   :  { %vm37_vm0 = vcmask 130048   ;;  %vm142_vm1 = vcmask 7168   ;;  %s269_s1 = inlined_call_operand.vmem [shape: bf16[16,128], index: 1, kind: input, shape index: {}]   ;;  %s270_s0 = inlined_call_operand.vmem [shape: f32[8,16], index: 0, kind: input, shape index: {}]   ;;  %s271_s3 = inlined_call_operand.vmem [shape: bf16[128,1], index: 3, kind: input, shape index: {}]   ;;  %s272_s2 = inlined_call_operand.vmem [shape: f32[1,128], index: 2, kind: input, shape index: {}]   ;;  %s273_s4 = inlined_call_operand.<no memory space> [shape: f32[1,1], index: 4, kind: input, shape index: {}]   ;;  %s274_s5 = inlined_call_operand.vmem [shape: f32[8,1], index: 5, kind: output, shape index: {}]  }
   0x1   :  { %v185_v0 = vld [vmem:[%s269_s1] sm:$0xff]  ;;  %v193_v2 = vld [vmem:[%s271_s3 + $0x38] sm:$0xff]  ;;  %v192_v4 = vld [vmem:[%s271_s3 + $0x30] sm:$0xff]  ;;  %v10_v11 = vstv %s273_s4 }
   0x2   :  { %v23_v1 = vld [vmem:[%s270_s0] sm:$0xff]  ;;  %48 = vmatpush.bf16.msra.mxu0 %v185_v0  ;;  %124 = vmatpush.bf16.msra.mxu1 %v193_v2  ;;  %v191_v5 = vld [vmem:[%s271_s3 + $0x28] sm:$0xff]  ;;  %v189_v7 = vld [vmem:[%s271_s3 + $0x18] sm:$0xff]  ;;  %11 = vst [vmem:[#allocation2] sm:$0x1] %v10_v11 }
   0x3   :  { %v24_v3 = vpack.c.bf16 %v23_v1, %v23_v1  ;;  %v190_v6 = vld [vmem:[%s271_s3 + $0x20] sm:$0xff]  ;;  %v188_v8 = vld [vmem:[%s271_s3 + $0x10] sm:$0xff]  ;;  %v187_v9 = vld [vmem:[%s271_s3 + $0x8] sm:$0xff] }
   0x4   :  { %v186_v10 = vld [vmem:[%s271_s3] sm:$0xff] }
   0x5   :  { %152 = vmatmul.msk.bf16.vlgmr.msra.gmra.mxu0 %vm37_vm0, %v24_v3  ;;  %v194_v12 = vld [vmem:[%s272_s2] ss:$0 sm:$0xff] }
   0x6   :  { %125 = vmatpush.bf16.msra.mxu1 %v192_v4 }
   0x9   :  { %v195_v18 = vld [vmem:[#allocation2] ss:$0 sm:$0xff] }
   0xa   :  { %126 = vmatpush.bf16.msra.mxu1 %v191_v5 }
   0xe   :  { %127 = vmatpush.bf16.msra.mxu1 %v190_v6 }
  0x12   :  { %128 = vmatpush.bf16.msra.mxu1 %v189_v7 }
  0x16   :  { %129 = vmatpush.bf16.msra.mxu1 %v188_v8 }
  0x1a   :  { %130 = vmatpush.bf16.msra.mxu1 %v187_v9 }
  0x1e   :  { %131 = vmatpush.bf16.msra.mxu1 %v186_v10 }
  0x82   :  { %v50_v13 = vpop.f32.mrf.mxu0 }
  0x83   :  { %v51_v14 = vadd.f32 %v194_v12, %v50_v13 }
  0x85   :  { %v54_v15 = vmax.f32 %v51_v14, 0.0 }
  0x87   :  { %v55_v16 = vpack.c.bf16 %v54_v15, %v54_v15 }
  0x89   :  { %132 = vmatmul.bf16.vlgmr.msra.gmra.mxu1 %v55_v16 }
  0x8a   :  { %v52_v17 = vpop.f32.mrf.mxu0 }
 0x106   :  { %v133_v19 = vpop.f32.mrf.mxu1 }
 0x107   :  { %v134_v20 = vadd.f32 %v195_v18, %v133_v19 }
 0x109   :  { %v137_v21 = vsub.f32 0.0, %v134_v20 }
 0x10b   :  { %v138_v22 = vmul.f32 1.442695, %v137_v21 }
 0x10d   :  { %196 = vpow2.f32 %v138_v22 }
 0x10e   :  { %v135_v23 = vpop.f32.mrf.mxu1 }
 0x113   :  { %v197_v24 = vpop.eup %196 }
 0x114   :  { %v140_v25 = vadd.f32 1.0, %v197_v24 }
 0x116   :  { %198 = vrcp.f32 %v140_v25 }
 0x11c   :  { %v199_v26 = vpop.eup %198 }
 0x11d   :  { %143 = vst.msk [vmem:[%s274_s5] sm:$0xff] %vm142_vm1, %v199_v26 }

</bundles_post_ra>
